<compile_context>
chip_gen: v5e
topology: v5e:2x2
jax: 0.10.0
libtpu: 0.0.40
codegen_flags: <defaults>
</compile_context>

<pallas_src>
import math

import jax
import jax.numpy as jnp
from jax.experimental import pallas as pl
from jax.experimental.pallas import tpu as pltpu


# ---------------------------------------------------------------------------
# Fused kernel: lane-batched MLP (Linear -> LayerNorm -> ReLU -> Linear)
#               + residual + per-sample softmax, one lane-dense tile per step.
# ---------------------------------------------------------------------------
def _decoder_kernel(x_ref, w1t_ref, hpar_ref, w2t_ref, b2_ref, gsum_ref,
                    out_ref):
    """One grid step == one tile of C = samples_per_tile * T MLP columns.

    Shapes (per step):
      x_ref   : (T, C)   lane c = b*T + i holds input[b, :T, i]
      w1t_ref : (H, T)   w1 transposed
      hpar_ref: (H, 3)   [b1 | gamma | beta] packed column-wise
      w2t_ref : (S, H)   w2 transposed
      b2_ref  : (S, 1)
      gsum_ref: (C, C)   block-diagonal ones (groups of T lanes)
      out_ref : (S, C)   softmax-normalized prediction columns
    """
    xs = x_ref[...]                                                    # (T, C)

    # hidden linear, lane-batched: h[k, c] = sum_j w1[j, k] * xs[j, c]
    h = jnp.dot(w1t_ref[...], xs, preferred_element_type=jnp.float32)  # (H, C)
    h = h + hpar_ref[:, 0:1]                                           # + b1

    # LayerNorm over the feature axis (axis 0 / sublanes); biased variance,
    # eps = 1e-5 like nn.LayerNorm.  d = h - mu is reused (one fewer pass).
    mu = jnp.mean(h, axis=0, keepdims=True)
    d = h - mu
    var = jnp.mean(d * d, axis=0, keepdims=True)
    hn = d * jax.lax.rsqrt(var + 1e-5)
    hn = hn * hpar_ref[:, 1:2] + hpar_ref[:, 2:3]                      # gamma, beta

    a = jnp.maximum(hn, 0.0)                                           # relu

    # output linear: y[s, c] = sum_k w2[k, s] * a[k, c]
    y = jnp.dot(w2t_ref[...], a, preferred_element_type=jnp.float32)   # (S, C)
    y = y + b2_ref[...]                                                # + b2
    y = y + xs[-1:, :]                     # residual input[b, -1, i], bcast over S

    # end_norm = softmax over each sample's T lanes (groups of T).
    # Subtracting the per-row max is shift-invariant within every group, so it
    # is exact (exp stays in (0, 1]); only a pathological >e^88 dynamic range
    # inside one row could underflow a whole group.
    m = jnp.max(y, axis=-1, keepdims=True)                             # (S, 1)
    e = jnp.exp(y - m)                                                 # (S, C)
    # Per-group sum broadcast back to every lane of its group, as one lane-
    # dense MXU matmul with the block-diagonal 0/1 matrix (no reshape that
    # crosses (8,128) tiles).
    l = jnp.dot(e, gsum_ref[...], preferred_element_type=jnp.float32)  # (S, C)
    # EUP approximate reciprocal + one Newton refinement (~f32 accurate),
    # instead of a vector divide.
    inv = pl.reciprocal(l, approx=True)
    inv = inv * (2.0 - l * inv)
    out_ref[...] = e * inv                                             # single store


def decoder_forward(x, params, *, space_size, hidden_size):
    """x: (B, T, E) float32.  Returns prediction of shape (B, space_size, T)."""
    B, T, E = x.shape
    assert T <= E, "forward indexes input[:, :, i] for i < tlength; needs T <= E"
    w1, b1, gamma, beta, w2, b2 = params
    H, S = hidden_size, space_size

    # ---- wrapper-side re-layouts (tiny, one-off XLA ops) --------------------
    # Parameters: transpose so every in-kernel matmul is a plain contraction.
    w1t = jnp.asarray(w1).T                                   # (H, T)
    w2t = jnp.asarray(w2).T                                   # (S, H)
    hpar = jnp.stack([b1, gamma, beta], axis=1)               # (H, 3)
    b2c = b2.reshape(S, 1)                                    # (S, 1)

    # Input: drop unused eigen columns (i >= T) and put every MLP column (b, i)
    # on the lane axis: slab[j, b*T + i] = x[b, j, i].
    cols_total = B * T
    x_slab = jnp.transpose(x[:, :, :T], (1, 0, 2)).reshape(T, cols_total)

    # ---- column-tile choice --------------------------------------------------
    # Small problems: a single grid step does everything.  Large problems: tile
    # whole samples, 128-lane aligned, a few hundred KiB per tile (fits v7x's
    # 64 MiB VMEM with double buffering to spare).
    MAX_TILE_COLS = 2048
    if cols_total <= MAX_TILE_COLS:
        samples_per_tile = B
    else:
        samples_per_tile = MAX_TILE_COLS // T
        while samples_per_tile > 1 and (samples_per_tile * T) % 128 != 0:
            samples_per_tile -= 1
        if (samples_per_tile * T) % 128 != 0:
            raise NotImplementedError("tlength does not allow a 128-lane-aligned tile")
    tile_cols = samples_per_tile * T
    padded_b = pl.cdiv(B, samples_per_tile) * samples_per_tile
    padded_cols = padded_b * T
    if padded_cols != cols_total:
        x_slab = jnp.pad(x_slab, ((0, 0), (0, padded_cols - cols_total)))
    num_tiles = padded_cols // tile_cols

    # Block-diagonal 0/1 matrix: lanes c, c' are in the same group iff they
    # belong to the same sample (groups of T consecutive lanes).
    grp = jnp.arange(tile_cols) // T
    gsum = (grp[:, None] == grp[None, :]).astype(jnp.float32)  # (tile_cols, tile_cols)

    # NOTE: the parameter inputs (w1t, hpar, w2t, b2c, gsum) use constant
    # index_maps; with num_tiles == 1 they are DMA'd exactly once, and for
    # multi-tile grids Pallas skips re-fetching an unchanged block index.
    out_slab = pl.pallas_call(
        _decoder_kernel,
        out_shape=jax.ShapeDtypeStruct((S, padded_cols), jnp.float32),
        grid_spec=pltpu.PrefetchScalarGridSpec(
            num_scalar_prefetch=0,
            grid=(num_tiles,),
            in_specs=[
                pl.BlockSpec((T, tile_cols), lambda g: (0, g)),          # x columns
                pl.BlockSpec((H, T), lambda g: (0, 0)),                  # w1.T
                pl.BlockSpec((H, 3), lambda g: (0, 0)),                  # [b1|gamma|beta]
                pl.BlockSpec((S, H), lambda g: (0, 0)),                  # w2.T
                pl.BlockSpec((S, 1), lambda g: (0, 0)),                  # b2
                pl.BlockSpec((tile_cols, tile_cols), lambda g: (0, 0)),  # group-sum
            ],
            out_specs=pl.BlockSpec((S, tile_cols), lambda g: (0, g)),
        ),
        compiler_params=pltpu.CompilerParams(
            # One tile: nothing to shard across v7x's two TensorCores.
            # Many tiles: each is independent -> megacore-parallel.
            dimension_semantics=("arbitrary",) if num_tiles == 1 else ("parallel",)),
    )(x_slab, w1t, hpar, w2t, b2c, gsum)

    # (S, B*T) lane-dense slab -> (B, S, T): cheap wrapper-side transpose on
    # the small output, keeping the kernel's store lane-dense.
    out = out_slab[:, :cols_total].reshape(S, B, T)
    return jnp.transpose(out, (1, 0, 2))


# ---------------------------------------------------------------------------
# Pure-JAX reference (mirrors the PyTorch forward semantics) for verification
# ---------------------------------------------------------------------------
def decoder_reference(x, params, *, space_size, hidden_size):
    B, T, E = x.shape
    w1, b1, gamma, beta, w2, b2 = params
    cols = jnp.transpose(x[:, :, :T], (0, 2, 1)).reshape(B * T, T)
    h = cols @ w1 + b1
    mu = h.mean(-1, keepdims=True)
    var = ((h - mu) ** 2).mean(-1, keepdims=True)
    h = (h - mu) / jnp.sqrt(var + 1e-5) * gamma + beta
    h = jnp.maximum(h, 0.0)
    y = h @ w2 + b2
    y = y + x[:, -1, :T].reshape(B * T, 1)
    pred = jnp.transpose(y.reshape(B, T, space_size), (0, 2, 1))
    return jax.nn.softmax(pred, axis=-1)


def init_params(key, d_in, hidden, d_out):
    """Deterministic init mimicking torch.nn.Linear / LayerNorm defaults."""
    k1, k2, k3, k4 = jax.random.split(key, 4)
    lim1 = 1.0 / math.sqrt(d_in)
    lim2 = 1.0 / math.sqrt(hidden)
    w1 = jax.random.uniform(k1, (d_in, hidden), jnp.float32, -lim1, lim1)
    b1 = jax.random.uniform(k2, (hidden,), jnp.float32, -lim1, lim1)
    gamma = jnp.ones((hidden,), jnp.float32)
    beta = jnp.zeros((hidden,), jnp.float32)
    w2 = jax.random.uniform(k3, (hidden, d_out), jnp.float32, -lim2, lim2)
    b2 = jax.random.uniform(k4, (d_out,), jnp.float32, -lim2, lim2)
    return (w1, b1, gamma, beta, w2, b2)


if __name__ == "__main__":
    # small shapes consistent with the module: input (batch, tlength, eigen_size)
    B, T, E = 2, 8, 8            # the forward loop over range(tlength) needs T <= E
    HIDDEN = 32                  # args.hidden_size
    SPACE = 16                   # self.space_size == self.output_size

    key = jax.random.PRNGKey(0)
    kx, kp = jax.random.split(key)
    x = jax.random.normal(kx, (B, T, E), jnp.float32)
    params = init_params(kp, d_in=T, hidden=HIDDEN, d_out=SPACE)

    out = decoder_forward(x, params, space_size=SPACE, hidden_size=HIDDEN)
    out = jax.block_until_ready(out)

    ref = decoder_reference(x, params, space_size=SPACE, hidden_size=HIDDEN)
    assert out.shape == (B, SPACE, T)
    # 1e-4 tolerance: the Newton-refined EUP approx-reciprocal in the softmax
    # denominator is accurate to ~1e-5 worst case; everything else is f32.
    assert jnp.allclose(out, ref, atol=1e-4, rtol=1e-4), "mismatch vs reference"

    print("KERNEL_OK")
</pallas_src>

<mosaic_0001>
module attributes {stable_mosaic.version = 11 : i64} {
  func.func @_decoder_kernel(%arg0: i32, %arg1: memref<8x16xf32, #tpu.memory_space<vmem>>, %arg2: memref<32x8xf32, #tpu.memory_space<vmem>>, %arg3: memref<32x3xf32, #tpu.memory_space<vmem>>, %arg4: memref<16x32xf32, #tpu.memory_space<vmem>>, %arg5: memref<16x1xf32, #tpu.memory_space<vmem>>, %arg6: memref<16x16xf32, #tpu.memory_space<vmem>>, %arg7: memref<16x16xf32, #tpu.memory_space<vmem>>) attributes {dimension_semantics = [#tpu.dimension_semantics<arbitrary>], iteration_bounds = array<i64: 1>, scalar_prefetch = 0 : i64, scratch_operands = 0 : i64, tpu.core_type = #tpu.core_type<tc>, window_params = [{transform_indices = @transform_0, window_bounds = array<i64: 8, 16>}, {pipeline_mode = #tpu.pipeline_mode<synchronous>, transform_indices = @transform_1, window_bounds = array<i64: 32, 8>}, {pipeline_mode = #tpu.pipeline_mode<synchronous>, transform_indices = @transform_2, window_bounds = array<i64: 32, 3>}, {pipeline_mode = #tpu.pipeline_mode<synchronous>, transform_indices = @transform_3, window_bounds = array<i64: 16, 32>}, {pipeline_mode = #tpu.pipeline_mode<synchronous>, transform_indices = @transform_4, window_bounds = array<i64: 16, 1>}, {pipeline_mode = #tpu.pipeline_mode<synchronous>, transform_indices = @transform_5, window_bounds = array<i64: 16, 16>}, {transform_indices = @transform_6, window_bounds = array<i64: 16, 16>}]} {
    %c0 = arith.constant 0 : index
    %c0_0 = arith.constant 0 : index
    %0 = vector.load %arg1[%c0, %c0_0] : memref<8x16xf32, #tpu.memory_space<vmem>>, vector<8x16xf32>
    %c0_1 = arith.constant 0 : index
    %c0_2 = arith.constant 0 : index
    %1 = vector.load %arg2[%c0_1, %c0_2] : memref<32x8xf32, #tpu.memory_space<vmem>>, vector<32x8xf32>
    %cst = arith.constant dense<0.000000e+00> : vector<32x16xf32>
    %2 = tpu.matmul %1, %0, %cst {dimension_numbers = #tpu.dot_dimension_numbers<[1], [0], [0], [1], [0, 0, 1, 1], [], []>} : vector<32x8xf32>, vector<8x16xf32>, vector<32x16xf32> -> vector<32x16xf32>
    %c0_3 = arith.constant 0 : index
    %c0_4 = arith.constant 0 : index
    %3 = vector.load %arg3[%c0_3, %c0_4] : memref<32x3xf32, #tpu.memory_space<vmem>>, vector<32x1xf32>
    %4 = vector.broadcast %3 : vector<32x1xf32> to vector<32x16xf32>
    %5 = arith.addf %2, %4 : vector<32x16xf32>
    %cst_5 = arith.constant dense<0.000000e+00> : vector<16xf32>
    %6 = vector.multi_reduction <add>, %5, %cst_5 [0] : vector<32x16xf32> to vector<16xf32>
    %7 = vector.shape_cast %6 : vector<16xf32> to vector<1x16xf32>
    %cst_6 = arith.constant 3.200000e+01 : f32
    %8 = vector.broadcast %cst_6 : f32 to vector<1x16xf32>
    %9 = arith.divf %7, %8 : vector<1x16xf32>
    %10 = vector.broadcast %9 : vector<1x16xf32> to vector<32x16xf32>
    %11 = arith.subf %5, %10 : vector<32x16xf32>
    %12 = arith.mulf %11, %11 : vector<32x16xf32>
    %cst_7 = arith.constant dense<0.000000e+00> : vector<16xf32>
    %13 = vector.multi_reduction <add>, %12, %cst_7 [0] : vector<32x16xf32> to vector<16xf32>
    %14 = vector.shape_cast %13 : vector<16xf32> to vector<1x16xf32>
    %cst_8 = arith.constant 3.200000e+01 : f32
    %15 = vector.broadcast %cst_8 : f32 to vector<1x16xf32>
    %16 = arith.divf %14, %15 : vector<1x16xf32>
    %cst_9 = arith.constant 9.99999974E-6 : f32
    %17 = vector.broadcast %cst_9 : f32 to vector<1x16xf32>
    %18 = arith.addf %16, %17 : vector<1x16xf32>
    %19 = math.rsqrt %18 : vector<1x16xf32>
    %20 = vector.broadcast %19 : vector<1x16xf32> to vector<32x16xf32>
    %21 = arith.mulf %11, %20 : vector<32x16xf32>
    %c0_10 = arith.constant 0 : index
    %c1 = arith.constant 1 : index
    %22 = vector.load %arg3[%c0_10, %c1] : memref<32x3xf32, #tpu.memory_space<vmem>>, vector<32x1xf32>
    %23 = vector.broadcast %22 : vector<32x1xf32> to vector<32x16xf32>
    %24 = arith.mulf %21, %23 : vector<32x16xf32>
    %c0_11 = arith.constant 0 : index
    %c2 = arith.constant 2 : index
    %25 = vector.load %arg3[%c0_11, %c2] : memref<32x3xf32, #tpu.memory_space<vmem>>, vector<32x1xf32>
    %26 = vector.broadcast %25 : vector<32x1xf32> to vector<32x16xf32>
    %27 = arith.addf %24, %26 : vector<32x16xf32>
    %cst_12 = arith.constant 0.000000e+00 : f32
    %28 = vector.broadcast %cst_12 : f32 to vector<32x16xf32>
    %29 = arith.maximumf %27, %28 : vector<32x16xf32>
    %c0_13 = arith.constant 0 : index
    %c0_14 = arith.constant 0 : index
    %30 = vector.load %arg4[%c0_13, %c0_14] : memref<16x32xf32, #tpu.memory_space<vmem>>, vector<16x32xf32>
    %cst_15 = arith.constant dense<0.000000e+00> : vector<16x16xf32>
    %31 = tpu.matmul %30, %29, %cst_15 {dimension_numbers = #tpu.dot_dimension_numbers<[1], [0], [0], [1], [0, 0, 1, 1], [], []>} : vector<16x32xf32>, vector<32x16xf32>, vector<16x16xf32> -> vector<16x16xf32>
    %c0_16 = arith.constant 0 : index
    %c0_17 = arith.constant 0 : index
    %32 = vector.load %arg5[%c0_16, %c0_17] : memref<16x1xf32, #tpu.memory_space<vmem>>, vector<16x1xf32>
    %33 = vector.broadcast %32 : vector<16x1xf32> to vector<16x16xf32>
    %34 = arith.addf %31, %33 : vector<16x16xf32>
    %35 = vector.extract_strided_slice %0 {offsets = [7, 0], sizes = [1, 16], strides = [1, 1]} : vector<8x16xf32> to vector<1x16xf32>
    %36 = vector.broadcast %35 : vector<1x16xf32> to vector<16x16xf32>
    %37 = arith.addf %34, %36 : vector<16x16xf32>
    %cst_18 = arith.constant dense<0xFF800000> : vector<16xf32>
    %38 = vector.multi_reduction <maximumf>, %37, %cst_18 [1] : vector<16x16xf32> to vector<16xf32>
    %39 = vector.shape_cast %38 : vector<16xf32> to vector<16x1xf32>
    %40 = vector.broadcast %39 : vector<16x1xf32> to vector<16x16xf32>
    %41 = arith.subf %37, %40 : vector<16x16xf32>
    %42 = math.exp %41 : vector<16x16xf32>
    %c0_19 = arith.constant 0 : index
    %c0_20 = arith.constant 0 : index
    %43 = vector.load %arg6[%c0_19, %c0_20] : memref<16x16xf32, #tpu.memory_space<vmem>>, vector<16x16xf32>
    %cst_21 = arith.constant dense<0.000000e+00> : vector<16x16xf32>
    %44 = tpu.matmul %42, %43, %cst_21 {dimension_numbers = #tpu.dot_dimension_numbers<[1], [0], [0], [1], [0, 0, 1, 1], [], []>} : vector<16x16xf32>, vector<16x16xf32>, vector<16x16xf32> -> vector<16x16xf32>
    %45 = tpu.reciprocal %44 {approx = true} : vector<16x16xf32> -> vector<16x16xf32>
    %46 = arith.mulf %44, %45 : vector<16x16xf32>
    %cst_22 = arith.constant 2.000000e+00 : f32
    %47 = vector.broadcast %cst_22 : f32 to vector<16x16xf32>
    %48 = arith.subf %47, %46 : vector<16x16xf32>
    %49 = arith.mulf %45, %48 : vector<16x16xf32>
    %50 = arith.mulf %42, %49 : vector<16x16xf32>
    %c0_23 = arith.constant 0 : index
    %c0_24 = arith.constant 0 : index
    %51 = vector.load %arg7[%c0_23, %c0_24] : memref<16x16xf32, #tpu.memory_space<vmem>>, vector<16x16xf32>
    tpu.vector_store %arg7[%c0_23, %c0_24], %50 {strides = array<i32>} : memref<16x16xf32, #tpu.memory_space<vmem>>, vector<16x16xf32>,
    return
  }
  func.func @transform_0(%arg0: i32) -> (i32, i32) {
    %c0_i32 = arith.constant 0 : i32
    %c0_i32_0 = arith.constant 0 : i32
    return %c0_i32, %arg0 : i32, i32
  }
  func.func @transform_1(%arg0: i32) -> (i32, i32) {
    %c0_i32 = arith.constant 0 : i32
    %c0_i32_0 = arith.constant 0 : i32
    %c0_i32_1 = arith.constant 0 : i32
    return %c0_i32, %c0_i32_0 : i32, i32
  }
  func.func @transform_2(%arg0: i32) -> (i32, i32) {
    %c0_i32 = arith.constant 0 : i32
    %c0_i32_0 = arith.constant 0 : i32
    %c0_i32_1 = arith.constant 0 : i32
    return %c0_i32, %c0_i32_0 : i32, i32
  }
  func.func @transform_3(%arg0: i32) -> (i32, i32) {
    %c0_i32 = arith.constant 0 : i32
    %c0_i32_0 = arith.constant 0 : i32
    %c0_i32_1 = arith.constant 0 : i32
    return %c0_i32, %c0_i32_0 : i32, i32
  }
  func.func @transform_4(%arg0: i32) -> (i32, i32) {
    %c0_i32 = arith.constant 0 : i32
    %c0_i32_0 = arith.constant 0 : i32
    %c0_i32_1 = arith.constant 0 : i32
    return %c0_i32, %c0_i32_0 : i32, i32
  }
  func.func @transform_5(%arg0: i32) -> (i32, i32) {
    %c0_i32 = arith.constant 0 : i32
    %c0_i32_0 = arith.constant 0 : i32
    %c0_i32_1 = arith.constant 0 : i32
    return %c0_i32, %c0_i32_0 : i32, i32
  }
  func.func @transform_6(%arg0: i32) -> (i32, i32) {
    %c0_i32 = arith.constant 0 : i32
    %c0_i32_0 = arith.constant 0 : i32
    return %c0_i32, %arg0 : i32, i32
  }
}

</mosaic_0001>

<bundles_post_ra>
// kernel: tpu_custom_call.1
= control target key start
LH: loop header
LB: loop body
LE: loop exit
PB: predicated region body
PF: predicated region fallthrough
CT: control target
= control target key end

     0   :  { %vm53_vm0 = vcmask 64512   ;;  %v381_v5 = vmov 0   ;;  %s494_s0 = inlined_call_operand.vmem [shape: f32[8,16], index: 0, kind: input, shape index: {}]   ;;  %s495_s1 = inlined_call_operand.vmem [shape: f32[32,8], index: 1, kind: input, shape index: {}]   ;;  %s496_s2 = inlined_call_operand.vmem [shape: f32[32,3], index: 2, kind: input, shape index: {}]   ;;  %s497_s3 = inlined_call_operand.vmem [shape: f32[16,32], index: 3, kind: input, shape index: {}]   ;;  %s498_s4 = inlined_call_operand.vmem [shape: f32[16,1], index: 4, kind: input, shape index: {}]   ;;  %s499_s5 = inlined_call_operand.vmem [shape: f32[16,16], index: 5, kind: input, shape index: {}]   ;;  %s500_s6 = inlined_call_operand.hbm [shape: f32[16,16], index: 6, kind: output, shape index: {}]  }
   0x1   :  { %v426_v0 = vld [vmem:[%s494_s0] sm:$0xff]  ;;  %v26_v1 = vld [vmem:[%s495_s1 + $0x8] sm:$0xff]  ;;  %v31_v4 = vld [vmem:[%s496_s2 + $0x10] sm:$0xff]  ;;  %334 = vset.pattern.permute.xlu0 %v381_v5  ;;  %335 = vset.pattern.permute.xlu1 %v381_v5 }
   0x2   :  { %v25_v2 = vld [vmem:[%s495_s1] sm:$0xff]  ;;  %326 = vmatpush.msra.mxu3 %v426_v0  ;;  %81 = vmatpush.msra.mxu0 %v426_v0 }
   0x3   :  { %v29_v3 = vld [vmem:[%s496_s2] sm:$0xff]  ;;  %319 = vmatmul.msk.f32.vlgmr.msra.gmra.mxu3 %vm53_vm0, %v26_v1  ;;  %318 = vmatmul.msk.f32.vlgmr.msra.gmra.mxu0 %vm53_vm0, %v25_v2 }
   0x4   :  { %11 = vsyncpa [#allocation3], 0  ;;  %35 = vperm.xlu0 %334, %v29_v3   ;;  %45 = vperm.xlu1 %335, %v31_v4   ;;  %v32_v6 = vld [vmem:[%s496_s2 + $0x18] sm:$0xff]  ;;  %v382_v7 = vmov 1   ;;  %v27_v8 = vld [vmem:[%s495_s1 + $0x10] sm:$0xff]  ;;  %v383_v11 = vmov 2  }
   0x5   :  { %336 = vset.pattern.permute.xlu2 %v382_v7  ;;  %v30_v9 = vld [vmem:[%s496_s2 + $0x8] sm:$0xff]  ;;  %v28_v10 = vld [vmem:[%s495_s1 + $0x18] sm:$0xff]  ;;  %v384_v17 = vmov 32.0   ;;  %vm95_vm1 = vcmask 130048   ;;  %vm212_vm6 = vcmask 261120   ;;  %s306_s25 = sshll.u32 %s500_s6, 4  ;;  %s307_s25 = int_to_ptr.hbm [resolvable:$true] %s306_s25 }
   0x6   :  { %167 = vperm.xlu2 %336, %v32_v6   ;;  %343 = vrcp.f32 %v384_v17  ;;  %s386_s26 = smov 128   ;;  %s387_s27 = smov 8  }
   0xb   :  { %320 = vmatmul.msk.f32.gmra.mxu3 %vm53_vm0, %v27_v8 }
   0xc   :  { %40 = vperm.xlu0 %334, %v30_v9   ;;  %50 = vperm.xlu1 %335, %v32_v6   ;;  %v344_v22 = vpop.eup %343 }
   0xd   :  { %v110_v26 = vmul.f32 32.0, %v344_v22  ;;  %vm114_vm2 = vweird.f32 %v344_v22 }
   0xe   :  { %163 = vperm.xlu2 %336, %v31_v4  }
   0xf   :  { %v111_v33 = vsub.f32 1.0, %v110_v26 }
  0x11   :  { %v112_v36 = vmul.f32 %v344_v22, %v111_v33 }
  0x13   :  { %321 = vmatmul.msk.f32.gmra.mxu3 %vm53_vm0, %v28_v10  ;;  %v113_v39 = vadd.f32 %v344_v22, %v112_v36  ;;  %v200_v10 = vld [vmem:[%s498_s4] sm:$0xff] }
  0x14   :  { %338 = vset.pattern.permute.xlu1 %v382_v7  ;;  %337 = vset.pattern.permute.xlu0 %v383_v11 }
  0x15   :  { %159 = vperm.xlu1 %338, %v30_v9   ;;  %187 = vperm.xlu0 %337, %v32_v6   ;;  %v115_v42 = vsel %vm114_vm2, %v344_v22, %v113_v39  ;;  %v199_v39 = vld [vmem:[%s497_s3 + $0x8] sm:$0xff] }
  0x16   :  { %339 = vset.pattern.permute.xlu2 %v383_v11  ;;  %v201_v11 = vld [vmem:[%s498_s4 + $0x8] sm:$0xff] }
  0x17   :  { %183 = vperm.xlu2 %339, %v31_v4  }
  0x1d   :  { %155 = vperm.xlu1 %338, %v29_v3   ;;  %175 = vperm.xlu0 %337, %v29_v3  }
  0x1f   :  { %179 = vperm.xlu2 %339, %v30_v9  }
  0x25   :  { %340 = vset.pattern.permute.xlu1 %v381_v5  ;;  %342 = vset.pattern.permute.xlu0 %v381_v5 }
  0x26   :  { %204 = vperm.xlu1 %340, %v200_v10  }
  0x27   :  { %341 = vset.pattern.permute.xlu2 %v381_v5 }
  0x28   :  { %209 = vperm.xlu2 %341, %v201_v11  }
  0x60   :  { %v168_v2 = vpop.permute.xlu2 %167 }
  0x68   :  { %v164_v6 = vpop.permute.xlu2 %163 }
  0x76   :  { %v36_v12 = vpop.permute.xlu0 %35  ;;  %v46_v14 = vpop.permute.xlu1 %45 }
  0x7e   :  { %v41_v15 = vpop.permute.xlu0 %40  ;;  %v51_v28 = vpop.permute.xlu1 %50 }
  0x80   :  { %v83_v16 = vpop.f32.mrf.mxu0 }
  0x81   :  { %v84_v19 = vadd.f32 %v83_v16, %v36_v12 }
  0x83   :  { %v96_v23 = vsel %vm95_vm1, %v84_v19, 0.0 }
  0x86   :  { %v86_v13 = vpop.f32.mrf.mxu3 }
  0x87   :  { %v87_v20 = vadd.f32 %v86_v13, %v41_v15  ;;  %v160_v13 = vpop.permute.xlu1 %159  ;;  %v184_v15 = vpop.permute.xlu2 %183 }
  0x88   :  { %v188_v17 = vpop.permute.xlu0 %187 }
  0x89   :  { %v97_v24 = vsel %vm95_vm1, %v87_v20, 0.0 }
  0x8a   :  { %v98_v27 = vadd.f32 %v97_v24, %v96_v23 }
  0x8e   :  { %v89_v18 = vpop.f32.mrf.mxu3 }
  0x8f   :  { %v90_v21 = vadd.f32 %v89_v18, %v46_v14  ;;  %v156_v26 = vpop.permute.xlu1 %155 }
  0x90   :  { %v176_v33 = vpop.permute.xlu0 %175 }
  0x91   :  { %v99_v25 = vsel %vm95_vm1, %v90_v21, 0.0 }
  0x92   :  { %v100_v31 = vadd.f32 %v99_v25, %v98_v27 }
  0x96   :  { %v92_v29 = vpop.f32.mrf.mxu3 }
  0x97   :  { %v93_v30 = vadd.f32 %v92_v29, %v51_v28 }
  0x99   :  { %v101_v32 = vsel %vm95_vm1, %v93_v30, 0.0 }
  0x9a   :  { %v102_v34 = vadd.f32 %v101_v32, %v100_v31 }
  0x9c   :  { %v103_v35 = vrot.slane %v102_v34, 4 }
  0x9e   :  { %v104_v37 = vadd.f32 %v103_v35, %v102_v34 }
  0xa0   :  { %v105_v38 = vrot.slane %v104_v37, 2 }
  0xa2   :  { %v106_v40 = vadd.f32 %v105_v38, %v104_v37  ;;  %v198_v38 = vld [vmem:[%s497_s3] sm:$0xff] }
  0xa4   :  { %v107_v41 = vrot.slane %v106_v40, 1 }
  0xa6   :  { %v108_v43 = vadd.f32 %v107_v41, %v106_v40  ;;  %v205_v40 = vpop.permute.xlu1 %204  ;;  %v242_v41 = vperm.slane %v426_v0, 7  ;;  %v257_v0 = vld [vmem:[%s499_s5] sm:$0xff] }
  0xa8   :  { %v116_v44 = vmul.f32 %v115_v42, %v108_v43 }
  0xaa   :  { %v117_v45 = vsub.f32 %v84_v19, %v116_v44  ;;  %v118_v46 = vsub.f32 %v87_v20, %v116_v44  ;;  %v119_v47 = vsub.f32 %v90_v21, %v116_v44  ;;  %v120_v48 = vsub.f32 %v93_v30, %v116_v44  ;;  %v180_v30 = vpop.permute.xlu2 %179 }
  0xac   :  { %v121_v49 = vmul.f32 %v117_v45, %v117_v45  ;;  %v122_v50 = vmul.f32 %v118_v46, %v118_v46  ;;  %v123_v51 = vmul.f32 %v119_v47, %v119_v47  ;;  %v124_v52 = vmul.f32 %v120_v48, %v120_v48 }
  0xae   :  { %v125_v53 = vsel %vm95_vm1, %v121_v49, 0.0  ;;  %v126_v54 = vsel %vm95_vm1, %v122_v50, 0.0  ;;  %v128_v56 = vsel %vm95_vm1, %v123_v51, 0.0  ;;  %v130_v58 = vsel %vm95_vm1, %v124_v52, 0.0  ;;  %v258_v51 = vld [vmem:[%s499_s5 + $0x8] sm:$0xff]  ;;  %s385_s5 = smov [#allocation2]  }
  0xaf   :  { %v127_v55 = vadd.f32 %v126_v54, %v125_v53  ;;  %279 = vmatpush.msra.mxu2 %v258_v51  ;;  %s304_s22 = sshll.u32 %s385_s5, 4  ;;  %s305_s22 = int_to_ptr.vmem [resolvable:$true] %s304_s22 }
  0xb1   :  { %v129_v57 = vadd.f32 %v128_v56, %v127_v55  ;;  %280 = vmatpush.msra.mxu2 %v257_v0 }
  0xb3   :  { %v131_v59 = vadd.f32 %v130_v58, %v129_v57 }
  0xb5   :  { %v132_v60 = vrot.slane %v131_v59, 4 }
  0xb7   :  { %v133_v61 = vadd.f32 %v132_v60, %v131_v59 }
  0xb9   :  { %v134_v62 = vrot.slane %v133_v61, 2 }
  0xbb   :  { %v135_v63 = vadd.f32 %v134_v62, %v133_v61 }
  0xbd   :  { %v136_v1 = vrot.slane %v135_v63, 1 }
  0xbf   :  { %v137_v3 = vadd.f32 %v136_v1, %v135_v63 }
  0xc1   :  { %v138_v4 = vmul.f32 %v137_v3, %v115_v42 }
  0xc3   :  { %v139_v5 = vadd.f32 1e-05, %v138_v4 }
  0xc5   :  { %345 = vrsqrt.f32 %v139_v5  ;;  %vm146_vm4 = vweird.f32 %v139_v5 }
  0xcb   :  { %v346_v7 = vpop.eup %345 }
  0xcc   :  { %v141_v8 = vmul.f32 %v346_v7, %v139_v5  ;;  %vm147_vm3 = vweird.f32 %v346_v7 }
  0xcd   :  { %vm148_vm5 = vmor %vm146_vm4, %vm147_vm3 }
  0xce   :  { %v142_v9 = vmul.f32 %v346_v7, %v141_v8 }
  0xd0   :  { %v143_v12 = vmul.f32 0.5, %v142_v9 }
  0xd2   :  { %v144_v14 = vsub.f32 1.5, %v143_v12 }
  0xd4   :  { %v145_v16 = vmul.f32 %v346_v7, %v144_v14 }
  0xd6   :  { %v149_v18 = vsel %vm148_vm5, %v346_v7, %v145_v16 }
  0xd7   :  { %v153_v19 = vmul.f32 %v149_v18, %v120_v48  ;;  %v152_v20 = vmul.f32 %v149_v18, %v119_v47  ;;  %v151_v21 = vmul.f32 %v149_v18, %v118_v46  ;;  %v150_v22 = vmul.f32 %v149_v18, %v117_v45  ;;  %v210_v46 = vpop.permute.xlu2 %209 }
  0xd9   :  { %v173_v23 = vmul.f32 %v168_v2, %v153_v19  ;;  %v172_v24 = vmul.f32 %v164_v6, %v152_v20  ;;  %v171_v25 = vmul.f32 %v160_v13, %v151_v21  ;;  %v170_v28 = vmul.f32 %v156_v26, %v150_v22 }
  0xdb   :  { %v192_v27 = vadd.f32 %v184_v15, %v172_v24  ;;  %v193_v29 = vadd.f32 %v188_v17, %v173_v23  ;;  %v191_v31 = vadd.f32 %v180_v30, %v171_v25  ;;  %v190_v35 = vadd.f32 %v176_v33, %v170_v28 }
  0xdd   :  { %v197_v32 = vmax.f32 %v193_v29, 0.0  ;;  %v196_v34 = vmax.f32 %v192_v27, 0.0  ;;  %v195_v36 = vmax.f32 %v191_v31, 0.0  ;;  %v194_v37 = vmax.f32 %v190_v35, 0.0 }
  0xdf   :  { %231 = vmatpush.msra.mxu1 %v197_v32 }
  0xe1   :  { %232 = vmatpush.msra.mxu1 %v196_v34 }
  0xe3   :  { %233 = vmatpush.msra.mxu1 %v195_v36 }
  0xe5   :  { %234 = vmatpush.msra.mxu1 %v194_v37 }
  0xe6   :  { %322 = vmatmul.msk.f32.vlgmr.msra.gmra.mxu1 %vm212_vm6, %v198_v38 }
  0xee   :  { %323 = vmatmul.msk.f32.gmra.mxu1 %vm212_vm6, %v199_v39 }
 0x163   :  { %v236_v42 = vpop.f32.mrf.mxu1 }
 0x164   :  { %v237_v43 = vadd.f32 %v236_v42, %v205_v40 }
 0x166   :  { %v243_v44 = vadd.f32 %v242_v41, %v237_v43 }
 0x168   :  { %v245_v45 = vsel %vm95_vm1, %v243_v44, -inf }
 0x169   :  { %246 = vmax.xlane.f32.xlu0 %v245_v45 }
 0x16b   :  { %v239_v47 = vpop.f32.mrf.mxu1 }
 0x16c   :  { %v240_v48 = vadd.f32 %v239_v47, %v210_v46 }
 0x16e   :  { %v244_v49 = vadd.f32 %v242_v41, %v240_v48 }
 0x170   :  { %v248_v50 = vsel %vm95_vm1, %v244_v49, -inf }
 0x171   :  { %249 = vmax.xlane.f32.xlu1 %v248_v50 }
 0x1dc   :  { %v247_v52 = vpop.xlane.xlu0 %246 }
 0x1dd   :  { %v251_v53 = vsub.f32 %v243_v44, %v247_v52 }
 0x1df   :  { %v253_v54 = vmul.f32 1.442695, %v251_v53 }
 0x1e1   :  { %347 = vpow2.f32 %v253_v54 }
 0x1e4   :  { %v250_v55 = vpop.xlane.xlu1 %249 }
 0x1e5   :  { %v252_v56 = vsub.f32 %v244_v49, %v250_v55 }
 0x1e7   :  { %v348_v57 = vpop.eup %347  ;;  %v255_v58 = vmul.f32 1.442695, %v252_v56 }
 0x1e8   :  { %324 = vmatmul.msk.f32.vlgmr.msra.gmra.mxu2 %vm95_vm1, %v348_v57 }
 0x1e9   :  { %349 = vpow2.f32 %v255_v58 }
 0x1ef   :  { %v350_v59 = vpop.eup %349 }
 0x1f0   :  { %325 = vmatmul.msk.f32.gmra.mxu2 %vm95_vm1, %v350_v59 }
 0x26b   :  { %v282_v60 = vpop.f32.mrf.mxu2 }
 0x26c   :  { %351 = vrcp.f32 %v282_v60 }
 0x272   :  { %v352_v61 = vpop.eup %351 }
 0x273   :  { %v290_v62 = vmul.f32 %v352_v61, %v282_v60  ;;  %v285_v63 = vpop.f32.mrf.mxu2 }
 0x274   :  { %353 = vrcp.f32 %v285_v63 }
 0x275   :  { %v292_v1 = vsub.f32 2.0, %v290_v62 }
 0x277   :  { %v294_v2 = vmul.f32 %v352_v61, %v292_v1 }
 0x279   :  { %v296_v3 = vmul.f32 %v348_v57, %v294_v2 }
 0x27a   :  { %v354_v4 = vpop.eup %353 }
 0x27b   :  { %298 = vst.msk [vmem:[#allocation2] sm:$0xff] %vm95_vm1, %v296_v3  ;;  %v291_v5 = vmul.f32 %v354_v4, %v285_v63 }
 0x27d   :  { %v293_v6 = vsub.f32 2.0, %v291_v5 }
 0x27f   :  { %v295_v7 = vmul.f32 %v354_v4, %v293_v6 }
 0x281   :  { %v297_v8 = vmul.f32 %v350_v59, %v295_v7 }
 0x283   :  { %299 = vst.msk [vmem:[#allocation2 + $0x8] sm:$0xff] %vm95_vm1, %v297_v8 }
 0x284   :  { %312 = dma.vmem_to_hbm [thread:$0]  %s305_s22, 256, %s307_s25, [#allocation3], %s386_s26, %s386_s26, %s387_s27  }
 0x285   :  { %379 = dma.done.wait [#allocation3], 256  }
 0x286   :  { %380 = vsyncadd [#allocation3], 4294967040 }
 0x287   :  { %317 = vsyncpa [#allocation3], 1 }

</bundles_post_ra>
